<compile_context>
chip_gen: v6e
topology: v6e:2x2x1
jax: 0.10.0
libtpu: 0.0.40
codegen_flags: <defaults>
</compile_context>

<pallas_src>
import functools
import math

import jax
import jax.numpy as jnp
from jax import lax
from jax.experimental import pallas as pl
from jax.experimental.pallas import tpu as pltpu


def _round_up(x, m):
    return ((x + m - 1) // m) * m


def _tpu_info():
    """Best-effort (vmem_capacity_bytes, num_tensorcores_per_chip)."""
    vmem_cap = 128 * 1024 * 1024
    num_cores = 1
    try:
        info = pltpu.get_tpu_info()
        vmem_cap = int(getattr(info, "vmem_capacity_bytes", vmem_cap))
        found = False
        for attr in ("num_cores", "num_tensorcores", "tensorcore_count",
                     "cores_per_chip", "num_cores_per_chip"):
            v = getattr(info, attr, None)
            if v:
                num_cores = max(1, int(v))
                found = True
                break
        if not found and vmem_cap <= 64 * 1024 * 1024:
            # v7x-class chip: 64 MiB VMEM per TensorCore, 2 TCs per chip.
            num_cores = 2
    except Exception:
        pass
    return vmem_cap, num_cores


# --------------------------------------------------------------------------
# Kernel 1: batched input projection over all timesteps (K-tiled matmul)
#   gx = x @ W_ih^T + (b_ih, with b_hh folded in for the r and z gates)
# --------------------------------------------------------------------------
def _input_proj_kernel(x_ref, w_ref, b_ref, gx_ref, acc_ref):
    # x_ref:  (R_BLK, K_BLK)   bf16   (rows = flattened (time, batch))
    # w_ref:  (K_BLK, 3*Hp)    bf16   (gate-separated, lane-padded)
    # b_ref:  (1, 3*Hp)        f32
    # gx_ref: (R_BLK, 3*Hp)    bf16   (stored bf16 -> half the HBM traffic)
    # acc_ref:(R_BLK, 3*Hp)    f32    K-reduction accumulator
    k = pl.program_id(1)

    @pl.when(k == 0)
    def _():
        acc_ref[...] = jnp.zeros_like(acc_ref)

    acc_ref[...] += jnp.dot(x_ref[...], w_ref[...],
                            preferred_element_type=jnp.float32)

    @pl.when(k == pl.num_programs(1) - 1)
    def _():
        gx_ref[...] = (acc_ref[...] + b_ref[...]).astype(gx_ref.dtype)


# --------------------------------------------------------------------------
# Kernel 2: the sequential GRU recurrence (time blocks on an arbitrary axis)
# --------------------------------------------------------------------------
def _gru_recurrence_kernel(gx_ref, h0_ref, whh_ref, bhhn_ref, out_ref,
                           h_scratch, *, unroll):
    # gx_ref:   (T_BLK, B_TILE, 3*Hp) bf16 -- precomputed x_t @ W_ih^T + bias
    # h0_ref:   (B_TILE, Hp)          f32
    # whh_ref:  (Hp, 3*Hp)            bf16 -- gate-separated, lane-padded
    # bhhn_ref: (1, Hp)               f32  -- n-gate b_hh only
    # out_ref:  (T_BLK, B_TILE, Hp)
    # h_scratch:(B_TILE, Hp)          f32  -- persists across the time axis
    t_blk_idx = pl.program_id(1)

    @pl.when(t_blk_idx == 0)
    def _():
        h_scratch[...] = h0_ref[...]

    hp = h_scratch.shape[-1]
    n_steps = gx_ref.shape[0]
    whh = whh_ref[...]              # resident for the whole time block
    bhh_n = bhhn_ref[...]

    def step(i, h):
        gx = gx_ref[i].astype(jnp.float32)                     # (B_TILE, 3Hp)
        gh = jnp.dot(h.astype(jnp.bfloat16), whh,
                     preferred_element_type=jnp.float32)
        # PyTorch gate order [r, z, n]; slices are lane-aligned (Hp % 128 == 0).
        r = jax.nn.sigmoid(gx[:, 0:hp] + gh[:, 0:hp])
        z = jax.nn.sigmoid(gx[:, hp:2 * hp] + gh[:, hp:2 * hp])
        n = jnp.tanh(gx[:, 2 * hp:3 * hp] + r * (gh[:, 2 * hp:3 * hp] + bhh_n))
        h_new = n + z * (h - n)                                # == (1-z)*n + z*h
        out_ref[i] = h_new.astype(out_ref.dtype)
        return h_new

    h_scratch[...] = lax.fori_loop(0, n_steps, step, h_scratch[...],
                                   unroll=unroll)


# --------------------------------------------------------------------------
# Wrapper
# --------------------------------------------------------------------------
def gru_forward(x, h0, w_ih, w_hh, b_ih, b_hh):
    """x: (T, B, I); h0: (B, H); w_ih: (3H, I); w_hh: (3H, H); b_*: (3H,).

    Returns (output (T, B, H), h_n (1, B, H)) matching torch.nn.GRU forward
    (num_layers=1, bidirectional=False, batch_first=False, bias=True).
    """
    T, B, I = x.shape
    H = h0.shape[-1]
    f32 = jnp.float32
    bf16 = jnp.bfloat16
    out_dtype = jnp.asarray(x).dtype

    vmem_cap, num_cores = _tpu_info()
    vmem_limit = int(vmem_cap * 3 // 4)       # leave headroom (esp. 64 MiB v7x)

    # ---- padded / tiled dimensions --------------------------------------
    Hp = _round_up(H, 128)                    # lane-aligned per-gate width
    Ip = _round_up(I, 128)                    # MXU-friendly contraction dim
    Bp = _round_up(B, 8)                      # sublane-aligned batch
    if Bp > 128:
        b_tile = 128
        Bp = _round_up(Bp, b_tile)
    elif num_cores >= 2 and Bp >= 16:
        # Give every TensorCore a batch tile during the sequential recurrence.
        b_tile = _round_up(pl.cdiv(Bp, num_cores), 8)
        Bp = _round_up(Bp, b_tile)
    else:
        b_tile = Bp
    nb = Bp // b_tile

    # ---- time blocking: generation aware + double-buffer aware ----------
    out_bytes = jnp.dtype(out_dtype).itemsize
    per_step = 2 * b_tile * (3 * Hp * 2 + Hp * out_bytes)   # gx(bf16)+out, x2 buffers
    whh_bytes = Hp * 3 * Hp * 2                             # bf16 W_hh block
    big_vmem = vmem_cap >= 96 * 1024 * 1024                 # v5e/v6e (128 MiB)
    rec_budget = (12 if big_vmem else 4) * 1024 * 1024
    rec_budget = max(1 * 1024 * 1024,
                     min(rec_budget, vmem_limit - 2 * whh_bytes - (2 << 20)))
    t_blk = max(1, min(T, rec_budget // per_step))
    if t_blk < T and T % t_blk != 0:
        # Prefer a divisor of T to avoid wasted padded timesteps.
        for cand in range(t_blk, max(1, t_blk // 2) - 1, -1):
            if T % cand == 0:
                t_blk = cand
                break
    Tp = _round_up(T, t_blk)
    nt = Tp // t_blk
    unroll = max(1, min(4, t_blk))            # partial unroll (vreg pressure)

    # ---- kernel-1 tiling: K over Ip, MXU-friendly M decoupled from t_blk --
    if Ip <= 1024:
        k_blk = Ip
    else:
        k_blk = 128
        for cand in (1024, 512, 256):
            if Ip % cand == 0:
                k_blk = cand
                break
    n_k = Ip // k_blk

    rows = Tp * Bp
    base_rows = t_blk * Bp
    per_row = 4 * k_blk + 24 * Hp             # x(bf16,x2) + gx(bf16,x2) + acc(f32)
    w1_bytes = 2 * k_blk * 3 * Hp * 2
    k1_budget = max(per_row, vmem_limit - w1_bytes - (2 << 20))
    max_rows = max(base_rows, min(k1_budget // per_row, 2048))
    g = 1
    for d in range(1, nt + 1):                # grow M in multiples of base_rows
        if nt % d == 0 and d * base_rows <= max_rows:
            g = d
            if d * base_rows >= 512:
                break
    r_blk = g * base_rows
    n_rb = rows // r_blk

    # ---- gate-separated, lane-padded weights (PyTorch gate order r, z, n) --
    w_ih = jnp.asarray(w_ih, f32).reshape(3, H, I)
    w_hh = jnp.asarray(w_hh, f32).reshape(3, H, H)
    b_ih3 = jnp.asarray(b_ih, f32).reshape(3, H)
    b_hh3 = jnp.asarray(b_hh, f32).reshape(3, H)

    wih_p = jnp.pad(w_ih, ((0, 0), (0, Hp - H), (0, Ip - I)))        # (3, Hp, Ip)
    wih_bf = jnp.transpose(wih_p, (2, 0, 1)).reshape(Ip, 3 * Hp).astype(bf16)
    whh_p = jnp.pad(w_hh, ((0, 0), (0, Hp - H), (0, Hp - H)))        # (3, Hp, Hp)
    whh_bf = jnp.transpose(whh_p, (2, 0, 1)).reshape(Hp, 3 * Hp).astype(bf16)

    # Fold b_hh (r, z gates) into the precomputed projection bias; the n-gate
    # b_hh must stay inside r * (...) so it remains in the recurrence.
    b_k1 = jnp.stack([b_ih3[0] + b_hh3[0], b_ih3[1] + b_hh3[1], b_ih3[2]], 0)
    bk1_p = jnp.pad(b_k1, ((0, 0), (0, Hp - H))).reshape(1, 3 * Hp)
    bhhn_p = jnp.pad(b_hh3[2], ((0, Hp - H),)).reshape(1, Hp)

    # ---- padded activations (x fed to the MXU kernel as bf16) ------------
    x_bf = jnp.pad(jnp.asarray(x).astype(bf16),
                   ((0, Tp - T), (0, Bp - B), (0, Ip - I)))
    x2_bf = x_bf.reshape(rows, Ip)
    h0_p = jnp.pad(jnp.asarray(h0, f32), ((0, Bp - B), (0, Hp - H)))

    def _call(single_buffer):
        def spec(shape, index_map, invariant=False):
            if single_buffer and invariant:
                return pl.BlockSpec(shape, index_map,
                                    pipeline_mode=pl.Buffered(1))
            return pl.BlockSpec(shape, index_map)

        # -- kernel 1: big input-projection matmul over all timesteps ------
        gx2 = pl.pallas_call(
            _input_proj_kernel,
            out_shape=jax.ShapeDtypeStruct((rows, 3 * Hp), bf16),
            grid_spec=pltpu.PrefetchScalarGridSpec(
                num_scalar_prefetch=0,
                grid=(n_rb, n_k),
                in_specs=[
                    spec((r_blk, k_blk), lambda r, k: (r, k)),
                    spec((k_blk, 3 * Hp), lambda r, k: (k, 0)),
                    spec((1, 3 * Hp), lambda r, k: (0, 0), invariant=True),
                ],
                out_specs=spec((r_blk, 3 * Hp), lambda r, k: (r, 0)),
                scratch_shapes=[pltpu.VMEM((r_blk, 3 * Hp), f32)],
            ),
            compiler_params=pltpu.CompilerParams(
                dimension_semantics=("parallel", "arbitrary"),
                vmem_limit_bytes=vmem_limit,
            ),
        )(x2_bf, wih_bf, bk1_p)

        gx = gx2.reshape(Tp, Bp, 3 * Hp)

        # -- kernel 2: sequential recurrence --------------------------------
        out_p = pl.pallas_call(
            functools.partial(_gru_recurrence_kernel, unroll=unroll),
            out_shape=jax.ShapeDtypeStruct((Tp, Bp, Hp), out_dtype),
            grid_spec=pltpu.PrefetchScalarGridSpec(
                num_scalar_prefetch=0,
                grid=(nb, nt),
                in_specs=[
                    spec((t_blk, b_tile, 3 * Hp), lambda b, t: (t, b, 0)),
                    spec((b_tile, Hp), lambda b, t: (b, 0), invariant=True),
                    spec((Hp, 3 * Hp), lambda b, t: (0, 0), invariant=True),
                    spec((1, Hp), lambda b, t: (0, 0), invariant=True),
                ],
                out_specs=spec((t_blk, b_tile, Hp), lambda b, t: (t, b, 0)),
                scratch_shapes=[pltpu.VMEM((b_tile, Hp), f32)],
            ),
            compiler_params=pltpu.CompilerParams(
                # batch tiles independent ("parallel", 2nd TC on v7x);
                # time is inherently sequential ("arbitrary").
                dimension_semantics=("parallel", "arbitrary"),
                vmem_limit_bytes=vmem_limit,
            ),
        )(gx, h0_p, whh_bf, bhhn_p)
        return out_p

    try:
        # Preferred: single-buffer the grid-invariant weight/bias/h0 blocks.
        out_p = jax.block_until_ready(_call(True))
    except Exception:
        # Fallback if pl.Buffered(1) is rejected by this jax/Mosaic version.
        out_p = _call(False)

    out = out_p[:T, :B, :H]
    h_n = out_p[T - 1, :B, :H][None, :, :]
    return out, h_n


# --------------------------------------------------------------------------
# Pure-JAX reference (f32) matching PyTorch GRU semantics
# --------------------------------------------------------------------------
def gru_reference(x, h0, w_ih, w_hh, b_ih, b_hh):
    H = h0.shape[-1]

    def step(h, x_t):
        gx = x_t @ w_ih.T + b_ih
        gh = h @ w_hh.T + b_hh
        r = jax.nn.sigmoid(gx[:, :H] + gh[:, :H])
        z = jax.nn.sigmoid(gx[:, H:2 * H] + gh[:, H:2 * H])
        n = jnp.tanh(gx[:, 2 * H:] + r * gh[:, 2 * H:])
        h_new = (1.0 - z) * n + z * h
        return h_new, h_new

    h_last, outs = jax.lax.scan(step, h0, x)
    return outs, h_last[None, :, :]


if __name__ == "__main__":
    import numpy as np

    # Small shapes consistent with GRU(input_size, hidden_size), num_layers=1,
    # bidirectional=False, batch_first=False.
    T, B, I, H = 8, 2, 16, 32

    key = jax.random.PRNGKey(0)
    k_x, k_wih, k_whh, k_bih, k_bhh = jax.random.split(key, 5)

    # PyTorch reset_parameters(): uniform(-1/sqrt(H), 1/sqrt(H))
    stdv = 1.0 / math.sqrt(H)
    w_ih = jax.random.uniform(k_wih, (3 * H, I), jnp.float32, -stdv, stdv)
    w_hh = jax.random.uniform(k_whh, (3 * H, H), jnp.float32, -stdv, stdv)
    b_ih = jax.random.uniform(k_bih, (3 * H,), jnp.float32, -stdv, stdv)
    b_hh = jax.random.uniform(k_bhh, (3 * H,), jnp.float32, -stdv, stdv)

    x = jax.random.normal(k_x, (T, B, I), jnp.float32)
    h0 = jnp.zeros((B, H), jnp.float32)     # hx=None -> zeros in PyTorch

    out, h_n = gru_forward(x, h0, w_ih, w_hh, b_ih, b_hh)
    out = jax.block_until_ready(out)
    h_n = jax.block_until_ready(h_n)

    out_ref, h_n_ref = gru_reference(x, h0, w_ih, w_hh, b_ih, b_hh)

    # bf16 MXU operands + bf16-stored gate pre-activations with f32 accumulation
    # -> loosened tolerance vs the pure-f32 reference.
    np.testing.assert_allclose(np.asarray(out), np.asarray(out_ref),
                               rtol=3e-2, atol=3e-2)
    np.testing.assert_allclose(np.asarray(h_n), np.asarray(h_n_ref),
                               rtol=3e-2, atol=3e-2)
    assert out.shape == (T, B, H)
    assert h_n.shape == (1, B, H)

    print("KERNEL_OK")
</pallas_src>

<mosaic_0001>
module attributes {stable_mosaic.version = 11 : i64} {
  func.func @_input_proj_kernel(%arg0: i32, %arg1: i32, %arg2: memref<64x128xbf16, #tpu.memory_space<vmem>>, %arg3: memref<128x384xbf16, #tpu.memory_space<vmem>>, %arg4: memref<1x384xf32, #tpu.memory_space<vmem>>, %arg5: memref<64x384xbf16, #tpu.memory_space<vmem>>, %arg6: memref<64x384xf32, #tpu.memory_space<vmem>>) attributes {dimension_semantics = [#tpu.dimension_semantics<parallel>, #tpu.dimension_semantics<arbitrary>], iteration_bounds = array<i64: 1, 1>, scalar_prefetch = 0 : i64, scratch_operands = 1 : i64, tpu.core_type = #tpu.core_type<tc>, window_params = [{transform_indices = @transform_0, window_bounds = array<i64: 64, 128>}, {transform_indices = @transform_1, window_bounds = array<i64: 128, 384>}, {pipeline_mode = #tpu.pipeline_mode<synchronous>, transform_indices = @transform_2, window_bounds = array<i64: 1, 384>}, {transform_indices = @transform_3, window_bounds = array<i64: 64, 384>}]} {
    %c0_i32 = arith.constant 0 : i32
    %0 = arith.cmpi eq, %arg1, %c0_i32 : i32
    %1 = arith.extui %0 : i1 to i32
    %c0_i32_0 = arith.constant 0 : i32
    %2 = arith.cmpi ne, %1, %c0_i32_0 : i32
    scf.if %2 {
      %cst_10 = arith.constant 0.000000e+00 : f32
      %12 = vector.broadcast %cst_10 : f32 to vector<64x384xf32>
      %c0_11 = arith.constant 0 : index
      %c0_12 = arith.constant 0 : index
      %13 = vector.load %arg6[%c0_11, %c0_12] : memref<64x384xf32, #tpu.memory_space<vmem>>, vector<64x384xf32>
      tpu.vector_store %arg6[%c0_11, %c0_12], %12 {strides = array<i32>} : memref<64x384xf32, #tpu.memory_space<vmem>>, vector<64x384xf32>,
    } else {
    }
    %c0 = arith.constant 0 : index
    %c0_1 = arith.constant 0 : index
    %3 = vector.load %arg6[%c0, %c0_1] : memref<64x384xf32, #tpu.memory_space<vmem>>, vector<64x384xf32>
    %c0_2 = arith.constant 0 : index
    %c0_3 = arith.constant 0 : index
    %4 = vector.load %arg2[%c0_2, %c0_3] : memref<64x128xbf16, #tpu.memory_space<vmem>>, vector<64x128xbf16>
    %c0_4 = arith.constant 0 : index
    %c0_5 = arith.constant 0 : index
    %5 = vector.load %arg3[%c0_4, %c0_5] : memref<128x384xbf16, #tpu.memory_space<vmem>>, vector<128x384xbf16>
    %cst = arith.constant dense<0.000000e+00> : vector<64x384xf32>
    %6 = tpu.matmul %4, %5, %cst {dimension_numbers = #tpu.dot_dimension_numbers<[1], [0], [0], [1], [0, 0, 1, 1], [], []>} : vector<64x128xbf16>, vector<128x384xbf16>, vector<64x384xf32> -> vector<64x384xf32>
    %7 = arith.addf %3, %6 : vector<64x384xf32>
    %c0_6 = arith.constant 0 : index
    %c0_7 = arith.constant 0 : index
    %8 = vector.load %arg6[%c0_6, %c0_7] : memref<64x384xf32, #tpu.memory_space<vmem>>, vector<64x384xf32>
    tpu.vector_store %arg6[%c0_6, %c0_7], %7 {strides = array<i32>} : memref<64x384xf32, #tpu.memory_space<vmem>>, vector<64x384xf32>,
    %c0_i32_8 = arith.constant 0 : i32
    %9 = arith.cmpi eq, %arg1, %c0_i32_8 : i32
    %10 = arith.extui %9 : i1 to i32
    %c0_i32_9 = arith.constant 0 : i32
    %11 = arith.cmpi ne, %10, %c0_i32_9 : i32
    scf.if %11 {
      %c0_10 = arith.constant 0 : index
      %c0_11 = arith.constant 0 : index
      %12 = vector.load %arg6[%c0_10, %c0_11] : memref<64x384xf32, #tpu.memory_space<vmem>>, vector<64x384xf32>
      %c0_12 = arith.constant 0 : index
      %c0_13 = arith.constant 0 : index
      %13 = vector.load %arg4[%c0_12, %c0_13] : memref<1x384xf32, #tpu.memory_space<vmem>>, vector<1x384xf32>
      %14 = vector.broadcast %13 : vector<1x384xf32> to vector<64x384xf32>
      %15 = arith.addf %12, %14 : vector<64x384xf32>
      %16 = arith.truncf %15 : vector<64x384xf32> to vector<64x384xbf16>
      %c0_14 = arith.constant 0 : index
      %c0_15 = arith.constant 0 : index
      %17 = vector.load %arg5[%c0_14, %c0_15] : memref<64x384xbf16, #tpu.memory_space<vmem>>, vector<64x384xbf16>
      tpu.vector_store %arg5[%c0_14, %c0_15], %16 {strides = array<i32>} : memref<64x384xbf16, #tpu.memory_space<vmem>>, vector<64x384xbf16>,
    } else {
    }
    return
  }
  func.func @transform_0(%arg0: i32, %arg1: i32) -> (i32, i32) {
    %c0_i32 = arith.constant 0 : i32
    return %arg0, %arg1 : i32, i32
  }
  func.func @transform_1(%arg0: i32, %arg1: i32) -> (i32, i32) {
    %c0_i32 = arith.constant 0 : i32
    %c0_i32_0 = arith.constant 0 : i32
    return %arg1, %c0_i32 : i32, i32
  }
  func.func @transform_2(%arg0: i32, %arg1: i32) -> (i32, i32) {
    %c0_i32 = arith.constant 0 : i32
    %c0_i32_0 = arith.constant 0 : i32
    %c0_i32_1 = arith.constant 0 : i32
    return %c0_i32, %c0_i32_0 : i32, i32
  }
  func.func @transform_3(%arg0: i32, %arg1: i32) -> (i32, i32) {
    %c0_i32 = arith.constant 0 : i32
    %c0_i32_0 = arith.constant 0 : i32
    return %arg0, %c0_i32 : i32, i32
  }
}

module attributes {stable_mosaic.version = 11 : i64} {
  func.func @_input_proj_kernel(%arg0: i32, %arg1: i32, %arg2: memref<64x128xbf16, #tpu.memory_space<vmem>>, %arg3: memref<128x384xbf16, #tpu.memory_space<vmem>>, %arg4: memref<1x384xf32, #tpu.memory_space<vmem>>, %arg5: memref<64x384xbf16, #tpu.memory_space<vmem>>, %arg6: memref<64x384xf32, #tpu.memory_space<vmem>>) attributes {dimension_semantics = [#tpu.dimension_semantics<parallel>, #tpu.dimension_semantics<arbitrary>], iteration_bounds = array<i64: 1, 1>, scalar_prefetch = 0 : i64, scratch_operands = 1 : i64, tpu.core_type = #tpu.core_type<tc>, window_params = [{transform_indices = @transform_0, window_bounds = array<i64: 64, 128>}, {transform_indices = @transform_1, window_bounds = array<i64: 128, 384>}, {pipeline_mode = #tpu.pipeline_mode<synchronous>, transform_indices = @transform_2, window_bounds = array<i64: 1, 384>}, {transform_indices = @transform_3, window_bounds = array<i64: 64, 384>}]} {
    %c0_i32 = arith.constant 0 : i32
    %0 = arith.cmpi eq, %arg1, %c0_i32 : i32
    %1 = arith.extui %0 : i1 to i32
    %c0_i32_0 = arith.constant 0 : i32
    %2 = arith.cmpi ne, %1, %c0_i32_0 : i32
    scf.if %2 {
      %cst_10 = arith.constant 0.000000e+00 : f32
      %12 = vector.broadcast %cst_10 : f32 to vector<64x384xf32>
      %c0_11 = arith.constant 0 : index
      %c0_12 = arith.constant 0 : index
      %13 = vector.load %arg6[%c0_11, %c0_12] : memref<64x384xf32, #tpu.memory_space<vmem>>, vector<64x384xf32>
      tpu.vector_store %arg6[%c0_11, %c0_12], %12 {strides = array<i32>} : memref<64x384xf32, #tpu.memory_space<vmem>>, vector<64x384xf32>,
    } else {
    }
    %c0 = arith.constant 0 : index
    %c0_1 = arith.constant 0 : index
    %3 = vector.load %arg6[%c0, %c0_1] : memref<64x384xf32, #tpu.memory_space<vmem>>, vector<64x384xf32>
    %c0_2 = arith.constant 0 : index
    %c0_3 = arith.constant 0 : index
    %4 = vector.load %arg2[%c0_2, %c0_3] : memref<64x128xbf16, #tpu.memory_space<vmem>>, vector<64x128xbf16>
    %c0_4 = arith.constant 0 : index
    %c0_5 = arith.constant 0 : index
    %5 = vector.load %arg3[%c0_4, %c0_5] : memref<128x384xbf16, #tpu.memory_space<vmem>>, vector<128x384xbf16>
    %cst = arith.constant dense<0.000000e+00> : vector<64x384xf32>
    %6 = tpu.matmul %4, %5, %cst {dimension_numbers = #tpu.dot_dimension_numbers<[1], [0], [0], [1], [0, 0, 1, 1], [], []>} : vector<64x128xbf16>, vector<128x384xbf16>, vector<64x384xf32> -> vector<64x384xf32>
    %7 = arith.addf %3, %6 : vector<64x384xf32>
    %c0_6 = arith.constant 0 : index
    %c0_7 = arith.constant 0 : index
    %8 = vector.load %arg6[%c0_6, %c0_7] : memref<64x384xf32, #tpu.memory_space<vmem>>, vector<64x384xf32>
    tpu.vector_store %arg6[%c0_6, %c0_7], %7 {strides = array<i32>} : memref<64x384xf32, #tpu.memory_space<vmem>>, vector<64x384xf32>,
    %c0_i32_8 = arith.constant 0 : i32
    %9 = arith.cmpi eq, %arg1, %c0_i32_8 : i32
    %10 = arith.extui %9 : i1 to i32
    %c0_i32_9 = arith.constant 0 : i32
    %11 = arith.cmpi ne, %10, %c0_i32_9 : i32
    scf.if %11 {
      %c0_10 = arith.constant 0 : index
      %c0_11 = arith.constant 0 : index
      %12 = vector.load %arg6[%c0_10, %c0_11] : memref<64x384xf32, #tpu.memory_space<vmem>>, vector<64x384xf32>
      %c0_12 = arith.constant 0 : index
      %c0_13 = arith.constant 0 : index
      %13 = vector.load %arg4[%c0_12, %c0_13] : memref<1x384xf32, #tpu.memory_space<vmem>>, vector<1x384xf32>
      %14 = vector.broadcast %13 : vector<1x384xf32> to vector<64x384xf32>
      %15 = arith.addf %12, %14 : vector<64x384xf32>
      %16 = arith.truncf %15 : vector<64x384xf32> to vector<64x384xbf16>
      %c0_14 = arith.constant 0 : index
      %c0_15 = arith.constant 0 : index
      %17 = vector.load %arg5[%c0_14, %c0_15] : memref<64x384xbf16, #tpu.memory_space<vmem>>, vector<64x384xbf16>
      tpu.vector_store %arg5[%c0_14, %c0_15], %16 {strides = array<i32>} : memref<64x384xbf16, #tpu.memory_space<vmem>>, vector<64x384xbf16>,
    } else {
    }
    return
  }
  func.func @transform_0(%arg0: i32, %arg1: i32) -> (i32, i32) {
    %c0_i32 = arith.constant 0 : i32
    return %arg0, %arg1 : i32, i32
  }
  func.func @transform_1(%arg0: i32, %arg1: i32) -> (i32, i32) {
    %c0_i32 = arith.constant 0 : i32
    %c0_i32_0 = arith.constant 0 : i32
    return %arg1, %c0_i32 : i32, i32
  }
  func.func @transform_2(%arg0: i32, %arg1: i32) -> (i32, i32) {
    %c0_i32 = arith.constant 0 : i32
    %c0_i32_0 = arith.constant 0 : i32
    %c0_i32_1 = arith.constant 0 : i32
    return %c0_i32, %c0_i32_0 : i32, i32
  }
  func.func @transform_3(%arg0: i32, %arg1: i32) -> (i32, i32) {
    %c0_i32 = arith.constant 0 : i32
    %c0_i32_0 = arith.constant 0 : i32
    return %arg0, %c0_i32 : i32, i32
  }
}

</mosaic_0001>

<bundles_post_ra>
// kernel: tpu_custom_call.1
= control target key start
LH: loop header
LB: loop body
LE: loop exit
PB: predicated region body
PF: predicated region fallthrough
CT: control target
= control target key end

     0   :  { %8 = vsyncpa [#allocation4], 0  ;;  %s932_s0 = inlined_call_operand.hbm [shape: bf16[64,128], index: 0, kind: input, shape index: {}]   ;;  %s933_s1 = inlined_call_operand.hbm [shape: bf16[128,384], index: 1, kind: input, shape index: {}]   ;;  %s934_s2 = inlined_call_operand.vmem [shape: f32[1,384], index: 2, kind: input, shape index: {}]   ;;  %s935_s3 = inlined_call_operand.hbm [shape: bf16[64,384], index: 3, kind: output, shape index: {}]  }
   0x1   :  { %9 = vsyncpa [#allocation7], 0 }
   0x2   :  { %10 = vsyncpa [#allocation5], 0  ;;  %s862_s12 = smov [#allocation3]  }
   0x3   :  { %s16_s13 = sshll.u32 %s862_s12, 4  ;;  %s17_s13 = int_to_ptr.vmem [resolvable:$true] %s16_s13 }
   0x4   :  { %s804_s14 = scalar_lea.vmem %s17_s13, 512  ;;  %p809_p1 = scmp.lt.s32.totalorder %s17_s13, %s17_s13 }
   0x5   :  { %p805_p0 = scmp.ne.s32.totalorder %s17_s13, %s804_s14  ;;  %p810_p2 = scmp.lt.s32.totalorder %s804_s14, %s804_s14 }
   0x7   :  { %p811_p3 = por %p810_p2, %p809_p1 }
   0x9   :  { %p812_p4 = pnand %p811_p3, %p805_p0 }
   0xb   :  { %815 = shalt.err (!%p812_p4)
}
   0xc   :  { %s863_s15 = smov 64   ;;  %s864_s16 = smov 4  }
   0xd   :  { %22 = dma.hbm_to_vmem [thread:$0]  %s932_s0, 512, %s17_s13, [#allocation4], %s863_s15, %s863_s15, %s864_s16  }
   0xe   :  { %s865_s19 = smov [#allocation6]  }
   0xf   :  { %s28_s20 = sshll.u32 %s865_s19, 4  ;;  %s29_s20 = int_to_ptr.vmem [resolvable:$true] %s28_s20 }
  0x10   :  { %s824_s21 = scalar_lea.vmem %s29_s20, 3072  ;;  %p829_p6 = scmp.lt.s32.totalorder %s29_s20, %s29_s20 }
  0x11   :  { %p825_p5 = scmp.ne.s32.totalorder %s29_s20, %s824_s21  ;;  %p830_p7 = scmp.lt.s32.totalorder %s824_s21, %s824_s21 }
  0x13   :  { %p831_p8 = por %p830_p7, %p829_p6 }
  0x15   :  { %p832_p9 = pnand %p831_p8, %p825_p5 }
  0x17   :  { %835 = shalt.err (!%p832_p9)
}
  0x18   :  { %s866_s22 = smov 192   ;;  %s867_s23 = smov 12  }
  0x19   :  { %34 = dma.hbm_to_vmem [thread:$0]  %s933_s1, 3072, %s29_s20, [#allocation7], %s866_s22, %s866_s22, %s867_s23  }
  0x1a   :  { %856 = dma.done.wait [#allocation4], 512  }
  0x1b   :  { %857 = vsyncadd [#allocation4], 4294966784 }
  0x1c   :  { %858 = dma.done.wait [#allocation7], 3072  }
  0x1d   :  { %859 = vsyncadd [#allocation7], 4294964224  ;;  %v868_v0 = vmov 0   ;;  %v760_v1 = vld [vmem:[#allocation6 + $0xac] ss:$12 sps:$4 sm:$0xff]   ;;  %v790_v19 = vld [vmem:[#allocation3] sm:$0xff]   ;;  %v503_v29 = vlaneseq }
  0x1e   :  { %320 = vmatprep.mubr.bf16.mxu0 %v868_v0  ;;  %v762_v2 = vld [vmem:[#allocation6 + $0xa8] ss:$12 sps:$4 sm:$0xff]   ;;  %288 = vmatprep.subr.bf16.mxu0 %v760_v1  ;;  %v765_v4 = vld [vmem:[#allocation6 + $0x90] ss:$12 sps:$4 sm:$0xff]   ;;  %v768_v7 = vld [vmem:[#allocation6 + $0x78] ss:$12 sps:$4 sm:$0xff]  }
  0x1f   :  { %v763_v3 = vld [vmem:[#allocation6 + $0x94] ss:$12 sps:$4 sm:$0xff]   ;;  %289 = vmatpush1.bf16.msra.mxu0 %v762_v2  ;;  %v766_v5 = vld [vmem:[#allocation6 + $0x7c] ss:$12 sps:$4 sm:$0xff]   ;;  %v773_v8 = vld [vmem:[#allocation6 + $0x98] ss:$12 sps:$4 sm:$0xff]   ;;  %744 = vmatprep.mubr.bf16.mxu1 %v790_v19 }
  0x20   :  { %290 = vmatprep.subr.bf16.mxu0 %v763_v3  ;;  %v769_v6 = vld [vmem:[#allocation6 + $0xb0] ss:$12 sps:$4 sm:$0xff]   ;;  %v777_v10 = vld [vmem:[#allocation6 + $0x80] ss:$12 sps:$4 sm:$0xff]   ;;  %v781_v13 = vld [vmem:[#allocation6 + $0x68] ss:$12 sps:$4 sm:$0xff]  }
  0x21   :  { %728 = vmatprep.subr.bf16.mxu1 %v769_v6  ;;  %v770_v9 = vld [vmem:[#allocation6 + $0x64] ss:$12 sps:$4 sm:$0xff]   ;;  %v772_v11 = vld [vmem:[#allocation6 + $0x60] ss:$12 sps:$4 sm:$0xff]   ;;  %v776_v14 = vld [vmem:[#allocation6 + $0x48] ss:$12 sps:$4 sm:$0xff]  }
  0x22   :  { %729 = vmatpush3.bf16.msra.mxu1 %v769_v6  ;;  %v774_v12 = vld [vmem:[#allocation6 + $0x4c] ss:$12 sps:$4 sm:$0xff]   ;;  %v778_v15 = vld [vmem:[#allocation6 + $0x34] ss:$12 sps:$4 sm:$0xff]   ;;  %v785_v16 = vld [vmem:[#allocation6 + $0x50] ss:$12 sps:$4 sm:$0xff]  }
  0x23   :  { %291 = vmatpush1.bf16.msra.mxu0 %v765_v4  ;;  %730 = vmatprep.subr.bf16.mxu1 %v773_v8  ;;  %v780_v17 = vld [vmem:[#allocation6 + $0x30] ss:$12 sps:$4 sm:$0xff]   ;;  %v789_v20 = vld [vmem:[#allocation6 + $0x38] ss:$12 sps:$4 sm:$0xff]   ;;  %v791_v23 = vld [vmem:[#allocation6 + $0x20] ss:$12 sps:$4 sm:$0xff]  }
  0x24   :  { %292 = vmatprep.subr.bf16.mxu0 %v766_v5  ;;  %v782_v18 = vld [vmem:[#allocation6 + $0x1c] ss:$12 sps:$4 sm:$0xff]   ;;  %v784_v21 = vld [vmem:[#allocation6 + $0x18] ss:$12 sps:$4 sm:$0xff]   ;;  %v788_v24 = vld [vmem:[#allocation6] ss:$12 sps:$4 sm:$0xff]  }
  0x25   :  { %v786_v22 = vld [vmem:[#allocation6 + $0x4] ss:$12 sps:$4 sm:$0xff]   ;;  %v792_v25 = vld [vmem:[#allocation6 + $0x8] ss:$12 sps:$4 sm:$0xff]   ;;  %v795_v28 = vld [vmem:[#allocation3 + $0x18] sm:$0xff]   ;;  %v504_v30 = vshrl.u32 %v503_v29, 7 }
  0x26   :  { %731 = vmatpush3.bf16.msra.mxu1 %v773_v8  ;;  %v794_v26 = vld [vmem:[#allocation3 + $0x10] sm:$0xff]   ;;  %v793_v27 = vld [vmem:[#allocation3 + $0x8] sm:$0xff]   ;;  %v501_v33 = vld [vmem:[%s934_s2] sm:$0x7]  ;;  %s869_s2 = smov [#allocation8]  }
  0x27   :  { %293 = vmatpush1.bf16.msra.mxu0 %v768_v7  ;;  %732 = vmatprep.subr.bf16.mxu1 %v777_v10  ;;  %v505_v31 = vsub.s32 0, %v504_v30  ;;  %v509_v32 = vsub.s32 1, %v504_v30  ;;  %v513_v34 = vsub.s32 2, %v504_v30  ;;  %s643_s26 = sshll.u32 %s869_s2, 4  ;;  %s644_s26 = int_to_ptr.vmem [resolvable:$true] %s643_s26 }
  0x28   :  { %294 = vmatprep.subr.bf16.mxu0 %v770_v9  ;;  %s836_s27 = scalar_lea.vmem %s644_s26, 1536  ;;  %p841_p11 = scmp.lt.s32.totalorder %s644_s26, %s644_s26 }
  0x29   :  { %v906_v35 = vrot.slane %v501_v33, %v505_v31  ;;  %v908_v36 = vrot.slane %v501_v33, %v509_v32  ;;  %v514_v38 = vrot.slane %v501_v33, %v513_v34  ;;  %p837_p10 = scmp.ne.s32.totalorder %s644_s26, %s836_s27  ;;  %p842_p12 = scmp.lt.s32.totalorder %s836_s27, %s836_s27 }
  0x2a   :  { %733 = vmatpush3.bf16.msra.mxu1 %v777_v10 }
  0x2b   :  { %295 = vmatpush1.bf16.msra.mxu0 %v772_v11  ;;  %734 = vmatprep.subr.bf16.mxu1 %v781_v13  ;;  %p843_p13 = por %p842_p12, %p841_p11 }
  0x2c   :  { %296 = vmatprep.subr.bf16.mxu0 %v774_v12 }
  0x2d   :  { %p844_p0 = pnand %p843_p13, %p837_p10 }
  0x2e   :  { %735 = vmatpush3.bf16.msra.mxu1 %v781_v13 }
  0x2f   :  { %297 = vmatpush1.bf16.msra.mxu0 %v776_v14  ;;  %736 = vmatprep.subr.bf16.mxu1 %v785_v16 }
  0x30   :  { %298 = vmatprep.subr.bf16.mxu0 %v778_v15 }
  0x32   :  { %737 = vmatpush3.bf16.msra.mxu1 %v785_v16 }
  0x33   :  { %299 = vmatpush1.bf16.msra.mxu0 %v780_v17  ;;  %738 = vmatprep.subr.bf16.mxu1 %v789_v20 }
  0x34   :  { %300 = vmatprep.subr.bf16.mxu0 %v782_v18 }
  0x36   :  { %739 = vmatpush3.bf16.msra.mxu1 %v789_v20 }
  0x37   :  { %301 = vmatpush1.bf16.msra.mxu0 %v784_v21  ;;  %740 = vmatprep.subr.bf16.mxu1 %v791_v23 }
  0x38   :  { %302 = vmatprep.subr.bf16.mxu0 %v786_v22 }
  0x3a   :  { %741 = vmatpush3.bf16.msra.mxu1 %v791_v23 }
  0x3b   :  { %303 = vmatpush1.bf16.msra.mxu0 %v788_v24  ;;  %742 = vmatprep.subr.bf16.mxu1 %v792_v25 }
  0x3e   :  { %321 = vmatmul.mubr.bf16.vlgmr.msra.gmra.mxu0 %v790_v19  ;;  %743 = vmatpush3.bf16.msra.mxu1 %v792_v25 }
  0x3f   :  { %330 = vmatprep.mubr.bf16.mxu0 %v868_v0 }
  0x41   :  { %745 = vmatmul.mubr.bf16.vlgmr.msra.gmra.mxu1 %v793_v27 }
  0x42   :  { %748 = vmatprep.mubr.bf16.mxu1 %v794_v26 }
  0x46   :  { %331 = vmatmul.mubr.bf16.gmra.mxu0 %v793_v27 }
  0x47   :  { %340 = vmatprep.mubr.bf16.mxu0 %v868_v0 }
  0x49   :  { %749 = vmatmul.mubr.bf16.gmra.mxu1 %v795_v28 }
  0x4e   :  { %341 = vmatmul.mubr.bf16.gmra.mxu0 %v794_v26 }
  0x4f   :  { %350 = vmatprep.mubr.bf16.mxu0 %v868_v0 }
  0x56   :  { %351 = vmatmul.mubr.bf16.gmra.mxu0 %v795_v28 }
  0xfe   :  { %v322_v37 = vpop.f32.mrf.mxu0 }
  0xff   :  { %v518_v40 = vadd.f32 %v906_v35, %v322_v37 }
 0x100   :  { %v324_v39 = vpop.f32.mrf.mxu0 }
 0x101   :  { %v519_v41 = vadd.f32 %v908_v36, %v324_v39  ;;  %v746_v43 = vpop.f32.mrf.mxu1 }
 0x102   :  { %v326_v42 = vpop.f32.mrf.mxu0  ;;  %v526_v45 = vadd.f32 %v746_v43, %v514_v38 }
 0x103   :  { %v700_v44 = vpack.c.bf16 %v519_v41, %v518_v40  ;;  %v395_v47 = vpop.f32.mrf.mxu1  ;;  %v521_v48 = vadd.f32 %v906_v35, %v326_v42 }
 0x104   :  { %v328_v46 = vpop.f32.mrf.mxu0  ;;  %v705_v50 = vpack.c.bf16 %v526_v45, %v526_v45  ;;  %v520_v51 = vadd.f32 %v514_v38, %v395_v47 }
 0x105   :  { %622 = vst [vmem:[#allocation8] sm:$0xff] %v700_v44  ;;  %v522_v49 = vadd.f32 %v908_v36, %v328_v46  ;;  %v747_v53 = vpop.f32.mrf.mxu1 }
 0x106   :  { %v332_v52 = vpop.f32.mrf.mxu0  ;;  %627 = vst [vmem:[#allocation8 + $0x20] sm:$0xf] %v705_v50  ;;  %v701_v55 = vpack.c.bf16 %v520_v51, %v520_v51  ;;  %v529_v56 = vadd.f32 %v747_v53, %v514_v38 }
 0x107   :  { %v702_v54 = vpack.c.bf16 %v522_v49, %v521_v48  ;;  %v398_v58 = vpop.f32.mrf.mxu1  ;;  %v524_v59 = vadd.f32 %v906_v35, %v332_v52 }
 0x108   :  { %v334_v57 = vpop.f32.mrf.mxu0  ;;  %623 = vst [vmem:[#allocation8 + $0x8] sm:$0xf] %v701_v55  ;;  %v707_v61 = vpack.c.bf16 %v529_v56, %v529_v56  ;;  %v523_v62 = vadd.f32 %v514_v38, %v398_v58 }
 0x109   :  { %624 = vst [vmem:[#allocation8 + $0xc] sm:$0xff] %v702_v54  ;;  %v525_v60 = vadd.f32 %v908_v36, %v334_v57  ;;  %v750_v0 = vpop.f32.mrf.mxu1 }
 0x10a   :  { %v336_v63 = vpop.f32.mrf.mxu0  ;;  %629 = vst [vmem:[#allocation8 + $0x2c] sm:$0xf] %v707_v61  ;;  %v703_v2 = vpack.c.bf16 %v523_v62, %v523_v62  ;;  %v538_v3 = vadd.f32 %v750_v0, %v514_v38 }
 0x10b   :  { %v704_v1 = vpack.c.bf16 %v525_v60, %v524_v59  ;;  %v411_v5 = vpop.f32.mrf.mxu1  ;;  %v527_v6 = vadd.f32 %v906_v35, %v336_v63 }
 0x10c   :  { %v338_v4 = vpop.f32.mrf.mxu0  ;;  %625 = vst [vmem:[#allocation8 + $0x14] sm:$0xf] %v703_v2  ;;  %v713_v8 = vpack.c.bf16 %v538_v3, %v538_v3  ;;  %v532_v9 = vadd.f32 %v514_v38, %v411_v5 }
 0x10d   :  { %626 = vst [vmem:[#allocation8 + $0x18] sm:$0xff] %v704_v1  ;;  %v528_v7 = vadd.f32 %v908_v36, %v338_v4  ;;  %v751_v11 = vpop.f32.mrf.mxu1 }
 0x10e   :  { %v342_v10 = vpop.f32.mrf.mxu0  ;;  %635 = vst [vmem:[#allocation8 + $0x50] sm:$0xf] %v713_v8  ;;  %v709_v13 = vpack.c.bf16 %v532_v9, %v532_v9  ;;  %v541_v14 = vadd.f32 %v751_v11, %v514_v38 }
 0x10f   :  { %v706_v12 = vpack.c.bf16 %v528_v7, %v527_v6  ;;  %v414_v16 = vpop.f32.mrf.mxu1  ;;  %v530_v17 = vadd.f32 %v906_v35, %v342_v10 }
 0x110   :  { %v344_v15 = vpop.f32.mrf.mxu0  ;;  %631 = vst [vmem:[#allocation8 + $0x38] sm:$0xf] %v709_v13  ;;  %v715_v19 = vpack.c.bf16 %v541_v14, %v541_v14  ;;  %v535_v20 = vadd.f32 %v514_v38, %v414_v16 }
 0x111   :  { %628 = vst [vmem:[#allocation8 + $0x24] sm:$0xff] %v706_v12  ;;  %v531_v18 = vadd.f32 %v908_v36, %v344_v15 }
 0x112   :  { %v346_v21 = vpop.f32.mrf.mxu0  ;;  %637 = vst [vmem:[#allocation8 + $0x5c] sm:$0xf] %v715_v19  ;;  %v711_v23 = vpack.c.bf16 %v535_v20, %v535_v20 }
 0x113   :  { %v708_v22 = vpack.c.bf16 %v531_v18, %v530_v17  ;;  %v533_v25 = vadd.f32 %v906_v35, %v346_v21 }
 0x114   :  { %v348_v24 = vpop.f32.mrf.mxu0  ;;  %633 = vst [vmem:[#allocation8 + $0x44] sm:$0xf] %v711_v23 }
 0x115   :  { %630 = vst [vmem:[#allocation8 + $0x30] sm:$0xff] %v708_v22  ;;  %v534_v26 = vadd.f32 %v908_v36, %v348_v24 }
 0x116   :  { %v352_v27 = vpop.f32.mrf.mxu0 }
 0x117   :  { %v710_v28 = vpack.c.bf16 %v534_v26, %v533_v25  ;;  %v536_v30 = vadd.f32 %v906_v35, %v352_v27 }
 0x118   :  { %v354_v29 = vpop.f32.mrf.mxu0 }
 0x119   :  { %632 = vst [vmem:[#allocation8 + $0x3c] sm:$0xff] %v710_v28  ;;  %v537_v31 = vadd.f32 %v908_v36, %v354_v29 }
 0x11a   :  { %v356_v32 = vpop.f32.mrf.mxu0 }
 0x11b   :  { %v712_v33 = vpack.c.bf16 %v537_v31, %v536_v30  ;;  %v539_v37 = vadd.f32 %v906_v35, %v356_v32 }
 0x11c   :  { %v358_v34 = vpop.f32.mrf.mxu0 }
 0x11d   :  { %634 = vst [vmem:[#allocation8 + $0x48] sm:$0xff] %v712_v33  ;;  %v540_v38 = vadd.f32 %v908_v36, %v358_v34 }
 0x11f   :  { %v714_v39 = vpack.c.bf16 %v540_v38, %v539_v37 }
 0x121   :  { %636 = vst [vmem:[#allocation8 + $0x54] sm:$0xff] %v714_v39 }
 0x122   :  { %847 = shalt.err (!%p844_p0)
}
 0x123   :  { %649 = dma.vmem_to_hbm [thread:$0]  %s644_s26, 1536, %s935_s3, [#allocation5], %s866_s22, %s866_s22, %s867_s23  }
 0x124   :  { %860 = dma.done.wait [#allocation5], 1536  }
 0x125   :  { %861 = vsyncadd [#allocation5], 4294965760 }
 0x126   :  { %653 = vsyncpa [#allocation4], 1 }
 0x127   :  { %654 = vsyncpa [#allocation7], 1 }
 0x128   :  { %655 = vsyncpa [#allocation5], 1 }

// kernel: tpu_custom_call.1
= control target key start
LH: loop header
LB: loop body
LE: loop exit
PB: predicated region body
PF: predicated region fallthrough
CT: control target
= control target key end

     0   :  { %8 = vsyncpa [#allocation4], 0  ;;  %s932_s0 = inlined_call_operand.hbm [shape: bf16[64,128], index: 0, kind: input, shape index: {}]   ;;  %s933_s1 = inlined_call_operand.hbm [shape: bf16[128,384], index: 1, kind: input, shape index: {}]   ;;  %s934_s2 = inlined_call_operand.vmem [shape: f32[1,384], index: 2, kind: input, shape index: {}]   ;;  %s935_s3 = inlined_call_operand.hbm [shape: bf16[64,384], index: 3, kind: output, shape index: {}]  }
   0x1   :  { %9 = vsyncpa [#allocation7], 0 }
   0x2   :  { %10 = vsyncpa [#allocation5], 0  ;;  %s862_s12 = smov [#allocation3]  }
   0x3   :  { %s16_s13 = sshll.u32 %s862_s12, 4  ;;  %s17_s13 = int_to_ptr.vmem [resolvable:$true] %s16_s13 }
   0x4   :  { %s804_s14 = scalar_lea.vmem %s17_s13, 512  ;;  %p809_p1 = scmp.lt.s32.totalorder %s17_s13, %s17_s13 }
   0x5   :  { %p805_p0 = scmp.ne.s32.totalorder %s17_s13, %s804_s14  ;;  %p810_p2 = scmp.lt.s32.totalorder %s804_s14, %s804_s14 }
   0x7   :  { %p811_p3 = por %p810_p2, %p809_p1 }
   0x9   :  { %p812_p4 = pnand %p811_p3, %p805_p0 }
   0xb   :  { %815 = shalt.err (!%p812_p4)
}
   0xc   :  { %s863_s15 = smov 64   ;;  %s864_s16 = smov 4  }
   0xd   :  { %22 = dma.hbm_to_vmem [thread:$0]  %s932_s0, 512, %s17_s13, [#allocation4], %s863_s15, %s863_s15, %s864_s16  }
   0xe   :  { %s865_s19 = smov [#allocation6]  }
   0xf   :  { %s28_s20 = sshll.u32 %s865_s19, 4  ;;  %s29_s20 = int_to_ptr.vmem [resolvable:$true] %s28_s20 }
  0x10   :  { %s824_s21 = scalar_lea.vmem %s29_s20, 3072  ;;  %p829_p6 = scmp.lt.s32.totalorder %s29_s20, %s29_s20 }
  0x11   :  { %p825_p5 = scmp.ne.s32.totalorder %s29_s20, %s824_s21  ;;  %p830_p7 = scmp.lt.s32.totalorder %s824_s21, %s824_s21 }
  0x13   :  { %p831_p8 = por %p830_p7, %p829_p6 }
  0x15   :  { %p832_p9 = pnand %p831_p8, %p825_p5 }
  0x17   :  { %835 = shalt.err (!%p832_p9)
}
  0x18   :  { %s866_s22 = smov 192   ;;  %s867_s23 = smov 12  }
  0x19   :  { %34 = dma.hbm_to_vmem [thread:$0]  %s933_s1, 3072, %s29_s20, [#allocation7], %s866_s22, %s866_s22, %s867_s23  }
  0x1a   :  { %856 = dma.done.wait [#allocation4], 512  }
  0x1b   :  { %857 = vsyncadd [#allocation4], 4294966784 }
  0x1c   :  { %858 = dma.done.wait [#allocation7], 3072  }
  0x1d   :  { %859 = vsyncadd [#allocation7], 4294964224  ;;  %v868_v0 = vmov 0   ;;  %v760_v1 = vld [vmem:[#allocation6 + $0xac] ss:$12 sps:$4 sm:$0xff]   ;;  %v790_v19 = vld [vmem:[#allocation3] sm:$0xff]   ;;  %v503_v29 = vlaneseq }
  0x1e   :  { %320 = vmatprep.mubr.bf16.mxu0 %v868_v0  ;;  %v762_v2 = vld [vmem:[#allocation6 + $0xa8] ss:$12 sps:$4 sm:$0xff]   ;;  %288 = vmatprep.subr.bf16.mxu0 %v760_v1  ;;  %v765_v4 = vld [vmem:[#allocation6 + $0x90] ss:$12 sps:$4 sm:$0xff]   ;;  %v768_v7 = vld [vmem:[#allocation6 + $0x78] ss:$12 sps:$4 sm:$0xff]  }
  0x1f   :  { %v763_v3 = vld [vmem:[#allocation6 + $0x94] ss:$12 sps:$4 sm:$0xff]   ;;  %289 = vmatpush1.bf16.msra.mxu0 %v762_v2  ;;  %v766_v5 = vld [vmem:[#allocation6 + $0x7c] ss:$12 sps:$4 sm:$0xff]   ;;  %v773_v8 = vld [vmem:[#allocation6 + $0x98] ss:$12 sps:$4 sm:$0xff]   ;;  %744 = vmatprep.mubr.bf16.mxu1 %v790_v19 }
  0x20   :  { %290 = vmatprep.subr.bf16.mxu0 %v763_v3  ;;  %v769_v6 = vld [vmem:[#allocation6 + $0xb0] ss:$12 sps:$4 sm:$0xff]   ;;  %v777_v10 = vld [vmem:[#allocation6 + $0x80] ss:$12 sps:$4 sm:$0xff]   ;;  %v781_v13 = vld [vmem:[#allocation6 + $0x68] ss:$12 sps:$4 sm:$0xff]  }
  0x21   :  { %728 = vmatprep.subr.bf16.mxu1 %v769_v6  ;;  %v770_v9 = vld [vmem:[#allocation6 + $0x64] ss:$12 sps:$4 sm:$0xff]   ;;  %v772_v11 = vld [vmem:[#allocation6 + $0x60] ss:$12 sps:$4 sm:$0xff]   ;;  %v776_v14 = vld [vmem:[#allocation6 + $0x48] ss:$12 sps:$4 sm:$0xff]  }
  0x22   :  { %729 = vmatpush3.bf16.msra.mxu1 %v769_v6  ;;  %v774_v12 = vld [vmem:[#allocation6 + $0x4c] ss:$12 sps:$4 sm:$0xff]   ;;  %v778_v15 = vld [vmem:[#allocation6 + $0x34] ss:$12 sps:$4 sm:$0xff]   ;;  %v785_v16 = vld [vmem:[#allocation6 + $0x50] ss:$12 sps:$4 sm:$0xff]  }
  0x23   :  { %291 = vmatpush1.bf16.msra.mxu0 %v765_v4  ;;  %730 = vmatprep.subr.bf16.mxu1 %v773_v8  ;;  %v780_v17 = vld [vmem:[#allocation6 + $0x30] ss:$12 sps:$4 sm:$0xff]   ;;  %v789_v20 = vld [vmem:[#allocation6 + $0x38] ss:$12 sps:$4 sm:$0xff]   ;;  %v791_v23 = vld [vmem:[#allocation6 + $0x20] ss:$12 sps:$4 sm:$0xff]  }
  0x24   :  { %292 = vmatprep.subr.bf16.mxu0 %v766_v5  ;;  %v782_v18 = vld [vmem:[#allocation6 + $0x1c] ss:$12 sps:$4 sm:$0xff]   ;;  %v784_v21 = vld [vmem:[#allocation6 + $0x18] ss:$12 sps:$4 sm:$0xff]   ;;  %v788_v24 = vld [vmem:[#allocation6] ss:$12 sps:$4 sm:$0xff]  }
  0x25   :  { %v786_v22 = vld [vmem:[#allocation6 + $0x4] ss:$12 sps:$4 sm:$0xff]   ;;  %v792_v25 = vld [vmem:[#allocation6 + $0x8] ss:$12 sps:$4 sm:$0xff]   ;;  %v795_v28 = vld [vmem:[#allocation3 + $0x18] sm:$0xff]   ;;  %v504_v30 = vshrl.u32 %v503_v29, 7 }
  0x26   :  { %731 = vmatpush3.bf16.msra.mxu1 %v773_v8  ;;  %v794_v26 = vld [vmem:[#allocation3 + $0x10] sm:$0xff]   ;;  %v793_v27 = vld [vmem:[#allocation3 + $0x8] sm:$0xff]   ;;  %v501_v33 = vld [vmem:[%s934_s2] sm:$0x7]  ;;  %s869_s2 = smov [#allocation8]  }
  0x27   :  { %293 = vmatpush1.bf16.msra.mxu0 %v768_v7  ;;  %732 = vmatprep.subr.bf16.mxu1 %v777_v10  ;;  %v505_v31 = vsub.s32 0, %v504_v30  ;;  %v509_v32 = vsub.s32 1, %v504_v30  ;;  %v513_v34 = vsub.s32 2, %v504_v30  ;;  %s643_s26 = sshll.u32 %s869_s2, 4  ;;  %s644_s26 = int_to_ptr.vmem [resolvable:$true] %s643_s26 }
  0x28   :  { %294 = vmatprep.subr.bf16.mxu0 %v770_v9  ;;  %s836_s27 = scalar_lea.vmem %s644_s26, 1536  ;;  %p841_p11 = scmp.lt.s32.totalorder %s644_s26, %s644_s26 }
  0x29   :  { %v906_v35 = vrot.slane %v501_v33, %v505_v31  ;;  %v908_v36 = vrot.slane %v501_v33, %v509_v32  ;;  %v514_v38 = vrot.slane %v501_v33, %v513_v34  ;;  %p837_p10 = scmp.ne.s32.totalorder %s644_s26, %s836_s27  ;;  %p842_p12 = scmp.lt.s32.totalorder %s836_s27, %s836_s27 }
  0x2a   :  { %733 = vmatpush3.bf16.msra.mxu1 %v777_v10 }
  0x2b   :  { %295 = vmatpush1.bf16.msra.mxu0 %v772_v11  ;;  %734 = vmatprep.subr.bf16.mxu1 %v781_v13  ;;  %p843_p13 = por %p842_p12, %p841_p11 }
  0x2c   :  { %296 = vmatprep.subr.bf16.mxu0 %v774_v12 }
  0x2d   :  { %p844_p0 = pnand %p843_p13, %p837_p10 }
  0x2e   :  { %735 = vmatpush3.bf16.msra.mxu1 %v781_v13 }
  0x2f   :  { %297 = vmatpush1.bf16.msra.mxu0 %v776_v14  ;;  %736 = vmatprep.subr.bf16.mxu1 %v785_v16 }
  0x30   :  { %298 = vmatprep.subr.bf16.mxu0 %v778_v15 }
  0x32   :  { %737 = vmatpush3.bf16.msra.mxu1 %v785_v16 }
  0x33   :  { %299 = vmatpush1.bf16.msra.mxu0 %v780_v17  ;;  %738 = vmatprep.subr.bf16.mxu1 %v789_v20 }
  0x34   :  { %300 = vmatprep.subr.bf16.mxu0 %v782_v18 }
  0x36   :  { %739 = vmatpush3.bf16.msra.mxu1 %v789_v20 }
  0x37   :  { %301 = vmatpush1.bf16.msra.mxu0 %v784_v21  ;;  %740 = vmatprep.subr.bf16.mxu1 %v791_v23 }
  0x38   :  { %302 = vmatprep.subr.bf16.mxu0 %v786_v22 }
  0x3a   :  { %741 = vmatpush3.bf16.msra.mxu1 %v791_v23 }
  0x3b   :  { %303 = vmatpush1.bf16.msra.mxu0 %v788_v24  ;;  %742 = vmatprep.subr.bf16.mxu1 %v792_v25 }
  0x3e   :  { %321 = vmatmul.mubr.bf16.vlgmr.msra.gmra.mxu0 %v790_v19  ;;  %743 = vmatpush3.bf16.msra.mxu1 %v792_v25 }
  0x3f   :  { %330 = vmatprep.mubr.bf16.mxu0 %v868_v0 }
  0x41   :  { %745 = vmatmul.mubr.bf16.vlgmr.msra.gmra.mxu1 %v793_v27 }
  0x42   :  { %748 = vmatprep.mubr.bf16.mxu1 %v794_v26 }
  0x46   :  { %331 = vmatmul.mubr.bf16.gmra.mxu0 %v793_v27 }
  0x47   :  { %340 = vmatprep.mubr.bf16.mxu0 %v868_v0 }
  0x49   :  { %749 = vmatmul.mubr.bf16.gmra.mxu1 %v795_v28 }
  0x4e   :  { %341 = vmatmul.mubr.bf16.gmra.mxu0 %v794_v26 }
  0x4f   :  { %350 = vmatprep.mubr.bf16.mxu0 %v868_v0 }
  0x56   :  { %351 = vmatmul.mubr.bf16.gmra.mxu0 %v795_v28 }
  0xfe   :  { %v322_v37 = vpop.f32.mrf.mxu0 }
  0xff   :  { %v518_v40 = vadd.f32 %v906_v35, %v322_v37 }
 0x100   :  { %v324_v39 = vpop.f32.mrf.mxu0 }
 0x101   :  { %v519_v41 = vadd.f32 %v908_v36, %v324_v39  ;;  %v746_v43 = vpop.f32.mrf.mxu1 }
 0x102   :  { %v326_v42 = vpop.f32.mrf.mxu0  ;;  %v526_v45 = vadd.f32 %v746_v43, %v514_v38 }
 0x103   :  { %v700_v44 = vpack.c.bf16 %v519_v41, %v518_v40  ;;  %v395_v47 = vpop.f32.mrf.mxu1  ;;  %v521_v48 = vadd.f32 %v906_v35, %v326_v42 }
 0x104   :  { %v328_v46 = vpop.f32.mrf.mxu0  ;;  %v705_v50 = vpack.c.bf16 %v526_v45, %v526_v45  ;;  %v520_v51 = vadd.f32 %v514_v38, %v395_v47 }
 0x105   :  { %622 = vst [vmem:[#allocation8] sm:$0xff] %v700_v44  ;;  %v522_v49 = vadd.f32 %v908_v36, %v328_v46  ;;  %v747_v53 = vpop.f32.mrf.mxu1 }
 0x106   :  { %v332_v52 = vpop.f32.mrf.mxu0  ;;  %627 = vst [vmem:[#allocation8 + $0x20] sm:$0xf] %v705_v50  ;;  %v701_v55 = vpack.c.bf16 %v520_v51, %v520_v51  ;;  %v529_v56 = vadd.f32 %v747_v53, %v514_v38 }
 0x107   :  { %v702_v54 = vpack.c.bf16 %v522_v49, %v521_v48  ;;  %v398_v58 = vpop.f32.mrf.mxu1  ;;  %v524_v59 = vadd.f32 %v906_v35, %v332_v52 }
 0x108   :  { %v334_v57 = vpop.f32.mrf.mxu0  ;;  %623 = vst [vmem:[#allocation8 + $0x8] sm:$0xf] %v701_v55  ;;  %v707_v61 = vpack.c.bf16 %v529_v56, %v529_v56  ;;  %v523_v62 = vadd.f32 %v514_v38, %v398_v58 }
 0x109   :  { %624 = vst [vmem:[#allocation8 + $0xc] sm:$0xff] %v702_v54  ;;  %v525_v60 = vadd.f32 %v908_v36, %v334_v57  ;;  %v750_v0 = vpop.f32.mrf.mxu1 }
 0x10a   :  { %v336_v63 = vpop.f32.mrf.mxu0  ;;  %629 = vst [vmem:[#allocation8 + $0x2c] sm:$0xf] %v707_v61  ;;  %v703_v2 = vpack.c.bf16 %v523_v62, %v523_v62  ;;  %v538_v3 = vadd.f32 %v750_v0, %v514_v38 }
 0x10b   :  { %v704_v1 = vpack.c.bf16 %v525_v60, %v524_v59  ;;  %v411_v5 = vpop.f32.mrf.mxu1  ;;  %v527_v6 = vadd.f32 %v906_v35, %v336_v63 }
 0x10c   :  { %v338_v4 = vpop.f32.mrf.mxu0  ;;  %625 = vst [vmem:[#allocation8 + $0x14] sm:$0xf] %v703_v2  ;;  %v713_v8 = vpack.c.bf16 %v538_v3, %v538_v3  ;;  %v532_v9 = vadd.f32 %v514_v38, %v411_v5 }
 0x10d   :  { %626 = vst [vmem:[#allocation8 + $0x18] sm:$0xff] %v704_v1  ;;  %v528_v7 = vadd.f32 %v908_v36, %v338_v4  ;;  %v751_v11 = vpop.f32.mrf.mxu1 }
 0x10e   :  { %v342_v10 = vpop.f32.mrf.mxu0  ;;  %635 = vst [vmem:[#allocation8 + $0x50] sm:$0xf] %v713_v8  ;;  %v709_v13 = vpack.c.bf16 %v532_v9, %v532_v9  ;;  %v541_v14 = vadd.f32 %v751_v11, %v514_v38 }
 0x10f   :  { %v706_v12 = vpack.c.bf16 %v528_v7, %v527_v6  ;;  %v414_v16 = vpop.f32.mrf.mxu1  ;;  %v530_v17 = vadd.f32 %v906_v35, %v342_v10 }
 0x110   :  { %v344_v15 = vpop.f32.mrf.mxu0  ;;  %631 = vst [vmem:[#allocation8 + $0x38] sm:$0xf] %v709_v13  ;;  %v715_v19 = vpack.c.bf16 %v541_v14, %v541_v14  ;;  %v535_v20 = vadd.f32 %v514_v38, %v414_v16 }
 0x111   :  { %628 = vst [vmem:[#allocation8 + $0x24] sm:$0xff] %v706_v12  ;;  %v531_v18 = vadd.f32 %v908_v36, %v344_v15 }
 0x112   :  { %v346_v21 = vpop.f32.mrf.mxu0  ;;  %637 = vst [vmem:[#allocation8 + $0x5c] sm:$0xf] %v715_v19  ;;  %v711_v23 = vpack.c.bf16 %v535_v20, %v535_v20 }
 0x113   :  { %v708_v22 = vpack.c.bf16 %v531_v18, %v530_v17  ;;  %v533_v25 = vadd.f32 %v906_v35, %v346_v21 }
 0x114   :  { %v348_v24 = vpop.f32.mrf.mxu0  ;;  %633 = vst [vmem:[#allocation8 + $0x44] sm:$0xf] %v711_v23 }
 0x115   :  { %630 = vst [vmem:[#allocation8 + $0x30] sm:$0xff] %v708_v22  ;;  %v534_v26 = vadd.f32 %v908_v36, %v348_v24 }
 0x116   :  { %v352_v27 = vpop.f32.mrf.mxu0 }
 0x117   :  { %v710_v28 = vpack.c.bf16 %v534_v26, %v533_v25  ;;  %v536_v30 = vadd.f32 %v906_v35, %v352_v27 }
 0x118   :  { %v354_v29 = vpop.f32.mrf.mxu0 }
 0x119   :  { %632 = vst [vmem:[#allocation8 + $0x3c] sm:$0xff] %v710_v28  ;;  %v537_v31 = vadd.f32 %v908_v36, %v354_v29 }
 0x11a   :  { %v356_v32 = vpop.f32.mrf.mxu0 }
 0x11b   :  { %v712_v33 = vpack.c.bf16 %v537_v31, %v536_v30  ;;  %v539_v37 = vadd.f32 %v906_v35, %v356_v32 }
 0x11c   :  { %v358_v34 = vpop.f32.mrf.mxu0 }
 0x11d   :  { %634 = vst [vmem:[#allocation8 + $0x48] sm:$0xff] %v712_v33  ;;  %v540_v38 = vadd.f32 %v908_v36, %v358_v34 }
 0x11f   :  { %v714_v39 = vpack.c.bf16 %v540_v38, %v539_v37 }
 0x121   :  { %636 = vst [vmem:[#allocation8 + $0x54] sm:$0xff] %v714_v39 }
 0x122   :  { %847 = shalt.err (!%p844_p0)
}
 0x123   :  { %649 = dma.vmem_to_hbm [thread:$0]  %s644_s26, 1536, %s935_s3, [#allocation5], %s866_s22, %s866_s22, %s867_s23  }
 0x124   :  { %860 = dma.done.wait [#allocation5], 1536  }
 0x125   :  { %861 = vsyncadd [#allocation5], 4294965760 }
 0x126   :  { %653 = vsyncpa [#allocation4], 1 }
 0x127   :  { %654 = vsyncpa [#allocation7], 1 }
 0x128   :  { %655 = vsyncpa [#allocation5], 1 }

</bundles_post_ra>
